<compile_context>
chip_gen: v5e
topology: v5e:2x2
jax: 0.10.0
libtpu: 0.0.40
codegen_flags: <defaults>
</compile_context>

<pallas_src>
import jax
import jax.numpy as jnp
from jax import lax
from jax.experimental import pallas as pl
from jax.experimental.pallas import tpu as pltpu

# ---- small DBRX-like config (tp_size = 1) ----
D_MODEL = 32
N_HEADS = 4
HEAD_DIM = D_MODEL // N_HEADS          # 8
KV_N_HEADS = 2                         # grouped-query attention
CLIP_QKV = 8.0
ROPE_THETA = 10000.0
SEQ = 8

Q_SIZE = N_HEADS * HEAD_DIM            # 32
KV_SIZE = KV_N_HEADS * HEAD_DIM        # 16
QKV_WIDTH = Q_SIZE + 2 * KV_SIZE       # 64
SCALING = HEAD_DIM ** -0.5
HALF = HEAD_DIM // 2
GROUP = N_HEADS // KV_N_HEADS          # q heads per kv head


def fused_dbrx_attn_kernel(x_ref, wqkv_ref, rot_ref, cos_ref, sin_ref,
                           bias_ref, wout_ref, o_ref):
    """Fused: clamp(x @ Wqkv) -> slab RoPE -> causal GQA attention -> out_proj."""
    S = x_ref.shape[0]

    # ---- 1) QKV projection (bf16 MXU, f32 accumulate) + clip ----
    x = x_ref[...].astype(jnp.bfloat16)
    qkv = jnp.dot(x, wqkv_ref[...], preferred_element_type=jnp.float32)
    qkv = jnp.clip(qkv, -CLIP_QKV, CLIP_QKV)                     # (S, 64) f32

    # ---- 2) slab-wide neox RoPE: one matmul + one FMA over the whole slab.
    # V columns pass through (cos=1, sin=0). Q columns already carry SCALING
    # inside cos/sin (applied post-clip, so clamp semantics are unchanged).
    rotated = jnp.dot(qkv.astype(jnp.bfloat16), rot_ref[...],
                      preferred_element_type=jnp.float32)        # (S, 64) f32
    qk = qkv * cos_ref[...] + rotated * sin_ref[...]             # (S, 64) f32

    bias = bias_ref[...]                                         # (GROUP*S, S) f32

    # ---- 3) attention, batched per KV group (GROUP q heads stacked on sublanes) ----
    ctx_cols = []
    for g in range(KV_N_HEADS):
        q_cols = [qk[:, (g * GROUP + j) * HEAD_DIM:(g * GROUP + j + 1) * HEAD_DIM]
                  for j in range(GROUP)]
        q_stack = jnp.concatenate(q_cols, axis=0).astype(jnp.bfloat16)  # (GROUP*S, 8)

        k_lo = Q_SIZE + g * HEAD_DIM
        v_lo = Q_SIZE + KV_SIZE + g * HEAD_DIM
        k_g = qk[:, k_lo:k_lo + HEAD_DIM].astype(jnp.bfloat16)          # (S, 8)
        v_g = qkv[:, v_lo:v_lo + HEAD_DIM].astype(jnp.bfloat16)         # (S, 8)

        # transpose-free scores: contract last dim of both operands
        scores = lax.dot_general(q_stack, k_g, (((1,), (1,)), ((), ())),
                                 preferred_element_type=jnp.float32)    # (GROUP*S, S)
        scores = scores + bias

        # softmax kept in f32 (v5e has no bf16 VPU/EUP)
        m = jnp.max(scores, axis=-1, keepdims=True)
        p = jnp.exp(scores - m)
        inv = pl.reciprocal(jnp.sum(p, axis=-1, keepdims=True), approx=True)
        ctx = jnp.dot(p.astype(jnp.bfloat16), v_g,
                      preferred_element_type=jnp.float32) * inv         # (GROUP*S, 8)

        ctx_cols.extend(ctx[j * S:(j + 1) * S, :] for j in range(GROUP))

    # lane-contiguous context slab -> ONE out_proj matmul
    ctx_full = jnp.concatenate(ctx_cols, axis=1).astype(jnp.bfloat16)   # (S, 32)
    o_ref[...] = jnp.dot(ctx_full, wout_ref[...],
                         preferred_element_type=jnp.float32)            # (S, 32) f32


# ---------------- host-side precomputed constants (cached in production) ----------------

def _rotation_matrix():
    """Block-diagonal signed permutation R with  x @ R == [-x2, x1] per roped head."""
    z = jnp.zeros((HALF, HALF), jnp.float32)
    e = jnp.eye(HALF, dtype=jnp.float32)
    r_head = jnp.concatenate(
        [jnp.concatenate([z, e], axis=1),
         jnp.concatenate([-e, z], axis=1)], axis=0)                    # (8, 8)
    n_roped = N_HEADS + KV_N_HEADS
    rot_qk = jnp.kron(jnp.eye(n_roped, dtype=jnp.float32), r_head)     # (48, 48)
    rot = jnp.zeros((QKV_WIDTH, QKV_WIDTH), jnp.float32)
    rot = rot.at[:n_roped * HEAD_DIM, :n_roped * HEAD_DIM].set(rot_qk)
    return rot


def _rope_tables(position_ids):
    """Per-column cos/sin tables over the whole QKV slab.

    Q columns carry SCALING (folded post-clip), K columns are plain RoPE,
    V columns pass through (cos=1, sin=0).
    """
    S = position_ids.shape[0]
    inv_freq = 1.0 / (ROPE_THETA ** (
        jnp.arange(0, HEAD_DIM, 2, dtype=jnp.float32) / HEAD_DIM))     # (HALF,)
    freqs = position_ids.astype(jnp.float32)[:, None] * inv_freq[None, :]  # (S, HALF)
    cos_h = jnp.concatenate([jnp.cos(freqs), jnp.cos(freqs)], axis=-1)     # (S, 8)
    sin_h = jnp.concatenate([jnp.sin(freqs), jnp.sin(freqs)], axis=-1)     # (S, 8)
    cos_full = jnp.concatenate(
        [jnp.tile(cos_h, (1, N_HEADS)) * SCALING,
         jnp.tile(cos_h, (1, KV_N_HEADS)),
         jnp.ones((S, KV_SIZE), jnp.float32)], axis=1)                 # (S, 64)
    sin_full = jnp.concatenate(
        [jnp.tile(sin_h, (1, N_HEADS)) * SCALING,
         jnp.tile(sin_h, (1, KV_N_HEADS)),
         jnp.zeros((S, KV_SIZE), jnp.float32)], axis=1)                # (S, 64)
    return cos_full, sin_full


def _causal_bias(S):
    row = jnp.arange(S, dtype=jnp.int32)[:, None]
    col = jnp.arange(S, dtype=jnp.int32)[None, :]
    bias = jnp.where(col <= row, 0.0, -1e30).astype(jnp.float32)       # (S, S)
    return jnp.tile(bias, (GROUP, 1))                                  # (GROUP*S, S)


def dbrx_attention(position_ids, hidden_states, wqkv, wout):
    S = hidden_states.shape[0]
    cos_full, sin_full = _rope_tables(position_ids)
    rot = _rotation_matrix().astype(jnp.bfloat16)       # entries in {-1,0,1}: exact in bf16
    bias = _causal_bias(S)
    wqkv_bf16 = wqkv.astype(jnp.bfloat16)
    wout_bf16 = wout.astype(jnp.bfloat16)

    return pl.pallas_call(
        fused_dbrx_attn_kernel,
        out_shape=jax.ShapeDtypeStruct((S, D_MODEL), jnp.float32),
        grid=(1,),
        in_specs=[
            pl.BlockSpec((S, D_MODEL), lambda i: (0, 0)),             # x
            pl.BlockSpec((D_MODEL, QKV_WIDTH), lambda i: (0, 0)),     # Wqkv (bf16)
            pl.BlockSpec((QKV_WIDTH, QKV_WIDTH), lambda i: (0, 0)),   # rotation (bf16)
            pl.BlockSpec((S, QKV_WIDTH), lambda i: (0, 0)),           # cos
            pl.BlockSpec((S, QKV_WIDTH), lambda i: (0, 0)),           # sin
            pl.BlockSpec((GROUP * S, S), lambda i: (0, 0)),           # causal bias
            pl.BlockSpec((D_MODEL, D_MODEL), lambda i: (0, 0)),       # Wout (bf16)
        ],
        out_specs=pl.BlockSpec((S, D_MODEL), lambda i: (0, 0)),
        compiler_params=pltpu.CompilerParams(dimension_semantics=("arbitrary",)),
    )(hidden_states, wqkv_bf16, rot, cos_full, sin_full, bias, wout_bf16)


if __name__ == "__main__":
    key = jax.random.PRNGKey(0)
    k1, k2, k3 = jax.random.split(key, 3)

    hidden_states = jax.random.normal(k1, (SEQ, D_MODEL), dtype=jnp.float32)
    position_ids = jnp.arange(SEQ, dtype=jnp.int32)

    # Synthetic weights (Wqkv: [d_model, q+2*kv], out_proj: [d_model, d_model])
    wqkv = jax.random.normal(k2, (D_MODEL, QKV_WIDTH), dtype=jnp.float32) * (D_MODEL ** -0.5)
    wout = jax.random.normal(k3, (D_MODEL, D_MODEL), dtype=jnp.float32) * (D_MODEL ** -0.5)

    out = dbrx_attention(position_ids, hidden_states, wqkv, wout)
    jax.block_until_ready(out)
    assert out.shape == (SEQ, D_MODEL)
    assert bool(jnp.all(jnp.isfinite(out)))
    print("KERNEL_OK")
</pallas_src>

<mosaic_0001>
module attributes {stable_mosaic.version = 11 : i64} {
  func.func @fused_dbrx_attn_kernel(%arg0: i32, %arg1: memref<8x32xf32, #tpu.memory_space<vmem>>, %arg2: memref<32x64xbf16, #tpu.memory_space<vmem>>, %arg3: memref<64x64xbf16, #tpu.memory_space<vmem>>, %arg4: memref<8x64xf32, #tpu.memory_space<vmem>>, %arg5: memref<8x64xf32, #tpu.memory_space<vmem>>, %arg6: memref<16x8xf32, #tpu.memory_space<vmem>>, %arg7: memref<32x32xbf16, #tpu.memory_space<vmem>>, %arg8: memref<8x32xf32, #tpu.memory_space<vmem>>) attributes {dimension_semantics = [#tpu.dimension_semantics<arbitrary>], iteration_bounds = array<i64: 1>, scalar_prefetch = 0 : i64, scratch_operands = 0 : i64, tpu.core_type = #tpu.core_type<tc>, window_params = [{pipeline_mode = #tpu.pipeline_mode<synchronous>, transform_indices = @transform_0, window_bounds = array<i64: 8, 32>}, {pipeline_mode = #tpu.pipeline_mode<synchronous>, transform_indices = @transform_1, window_bounds = array<i64: 32, 64>}, {pipeline_mode = #tpu.pipeline_mode<synchronous>, transform_indices = @transform_2, window_bounds = array<i64: 64, 64>}, {pipeline_mode = #tpu.pipeline_mode<synchronous>, transform_indices = @transform_3, window_bounds = array<i64: 8, 64>}, {pipeline_mode = #tpu.pipeline_mode<synchronous>, transform_indices = @transform_4, window_bounds = array<i64: 8, 64>}, {pipeline_mode = #tpu.pipeline_mode<synchronous>, transform_indices = @transform_5, window_bounds = array<i64: 16, 8>}, {pipeline_mode = #tpu.pipeline_mode<synchronous>, transform_indices = @transform_6, window_bounds = array<i64: 32, 32>}, {pipeline_mode = #tpu.pipeline_mode<synchronous>, transform_indices = @transform_7, window_bounds = array<i64: 8, 32>}]} {
    %c0 = arith.constant 0 : index
    %c0_0 = arith.constant 0 : index
    %0 = vector.load %arg1[%c0, %c0_0] : memref<8x32xf32, #tpu.memory_space<vmem>>, vector<8x32xf32>
    %1 = arith.truncf %0 : vector<8x32xf32> to vector<8x32xbf16>
    %c0_1 = arith.constant 0 : index
    %c0_2 = arith.constant 0 : index
    %2 = vector.load %arg2[%c0_1, %c0_2] : memref<32x64xbf16, #tpu.memory_space<vmem>>, vector<32x64xbf16>
    %cst = arith.constant dense<0.000000e+00> : vector<8x64xf32>
    %3 = tpu.matmul %1, %2, %cst {dimension_numbers = #tpu.dot_dimension_numbers<[1], [0], [0], [1], [0, 0, 1, 1], [], []>} : vector<8x32xbf16>, vector<32x64xbf16>, vector<8x64xf32> -> vector<8x64xf32>
    %cst_3 = arith.constant -8.000000e+00 : f32
    %cst_4 = arith.constant 8.000000e+00 : f32
    %4 = vector.broadcast %cst_3 : f32 to vector<8x64xf32>
    %5 = arith.maximumf %4, %3 : vector<8x64xf32>
    %6 = vector.broadcast %cst_4 : f32 to vector<8x64xf32>
    %7 = arith.minimumf %6, %5 : vector<8x64xf32>
    %8 = arith.truncf %7 : vector<8x64xf32> to vector<8x64xbf16>
    %c0_5 = arith.constant 0 : index
    %c0_6 = arith.constant 0 : index
    %9 = vector.load %arg3[%c0_5, %c0_6] : memref<64x64xbf16, #tpu.memory_space<vmem>>, vector<64x64xbf16>
    %cst_7 = arith.constant dense<0.000000e+00> : vector<8x64xf32>
    %10 = tpu.matmul %8, %9, %cst_7 {dimension_numbers = #tpu.dot_dimension_numbers<[1], [0], [0], [1], [0, 0, 1, 1], [], []>} : vector<8x64xbf16>, vector<64x64xbf16>, vector<8x64xf32> -> vector<8x64xf32>
    %c0_8 = arith.constant 0 : index
    %c0_9 = arith.constant 0 : index
    %11 = vector.load %arg4[%c0_8, %c0_9] : memref<8x64xf32, #tpu.memory_space<vmem>>, vector<8x64xf32>
    %12 = arith.mulf %7, %11 : vector<8x64xf32>
    %c0_10 = arith.constant 0 : index
    %c0_11 = arith.constant 0 : index
    %13 = vector.load %arg5[%c0_10, %c0_11] : memref<8x64xf32, #tpu.memory_space<vmem>>, vector<8x64xf32>
    %14 = arith.mulf %10, %13 : vector<8x64xf32>
    %15 = arith.addf %12, %14 : vector<8x64xf32>
    %c0_12 = arith.constant 0 : index
    %c0_13 = arith.constant 0 : index
    %16 = vector.load %arg6[%c0_12, %c0_13] : memref<16x8xf32, #tpu.memory_space<vmem>>, vector<16x8xf32>
    %17 = vector.extract_strided_slice %15 {offsets = [0, 0], sizes = [8, 8], strides = [1, 1]} : vector<8x64xf32> to vector<8x8xf32>
    %18 = vector.extract_strided_slice %15 {offsets = [0, 8], sizes = [8, 8], strides = [1, 1]} : vector<8x64xf32> to vector<8x8xf32>
    %19 = tpu.concatenate %17, %18 in 0 : vector<8x8xf32>, vector<8x8xf32> -> vector<16x8xf32>
    %20 = arith.truncf %19 : vector<16x8xf32> to vector<16x8xbf16>
    %21 = vector.extract_strided_slice %15 {offsets = [0, 32], sizes = [8, 8], strides = [1, 1]} : vector<8x64xf32> to vector<8x8xf32>
    %22 = arith.truncf %21 : vector<8x8xf32> to vector<8x8xbf16>
    %23 = vector.extract_strided_slice %7 {offsets = [0, 48], sizes = [8, 8], strides = [1, 1]} : vector<8x64xf32> to vector<8x8xf32>
    %24 = arith.truncf %23 : vector<8x8xf32> to vector<8x8xbf16>
    %cst_14 = arith.constant dense<0.000000e+00> : vector<16x8xf32>
    %25 = tpu.matmul %20, %22, %cst_14 {dimension_numbers = #tpu.dot_dimension_numbers<[1], [1], [0], [0], [0, 0, 1, 0], [], []>} : vector<16x8xbf16>, vector<8x8xbf16>, vector<16x8xf32> -> vector<16x8xf32>
    %26 = arith.addf %25, %16 : vector<16x8xf32>
    %cst_15 = arith.constant dense<0xFF800000> : vector<16xf32>
    %27 = vector.multi_reduction <maximumf>, %26, %cst_15 [1] : vector<16x8xf32> to vector<16xf32>
    %28 = vector.shape_cast %27 : vector<16xf32> to vector<16x1xf32>
    %29 = vector.broadcast %28 : vector<16x1xf32> to vector<16x8xf32>
    %30 = arith.subf %26, %29 : vector<16x8xf32>
    %31 = math.exp %30 : vector<16x8xf32>
    %cst_16 = arith.constant dense<0.000000e+00> : vector<16xf32>
    %32 = vector.multi_reduction <add>, %31, %cst_16 [1] : vector<16x8xf32> to vector<16xf32>
    %33 = vector.shape_cast %32 : vector<16xf32> to vector<16x1xf32>
    %34 = tpu.reciprocal %33 {approx = true} : vector<16x1xf32> -> vector<16x1xf32>
    %35 = arith.truncf %31 : vector<16x8xf32> to vector<16x8xbf16>
    %cst_17 = arith.constant dense<0.000000e+00> : vector<16x8xf32>
    %36 = tpu.matmul %35, %24, %cst_17 {dimension_numbers = #tpu.dot_dimension_numbers<[1], [0], [0], [1], [0, 0, 1, 1], [], []>} : vector<16x8xbf16>, vector<8x8xbf16>, vector<16x8xf32> -> vector<16x8xf32>
    %37 = vector.broadcast %34 : vector<16x1xf32> to vector<16x8xf32>
    %38 = arith.mulf %36, %37 : vector<16x8xf32>
    %39 = vector.extract_strided_slice %38 {offsets = [0, 0], sizes = [8, 8], strides = [1, 1]} : vector<16x8xf32> to vector<8x8xf32>
    %40 = vector.extract_strided_slice %38 {offsets = [8, 0], sizes = [8, 8], strides = [1, 1]} : vector<16x8xf32> to vector<8x8xf32>
    %41 = vector.extract_strided_slice %15 {offsets = [0, 16], sizes = [8, 8], strides = [1, 1]} : vector<8x64xf32> to vector<8x8xf32>
    %42 = vector.extract_strided_slice %15 {offsets = [0, 24], sizes = [8, 8], strides = [1, 1]} : vector<8x64xf32> to vector<8x8xf32>
    %43 = tpu.concatenate %41, %42 in 0 : vector<8x8xf32>, vector<8x8xf32> -> vector<16x8xf32>
    %44 = arith.truncf %43 : vector<16x8xf32> to vector<16x8xbf16>
    %45 = vector.extract_strided_slice %15 {offsets = [0, 40], sizes = [8, 8], strides = [1, 1]} : vector<8x64xf32> to vector<8x8xf32>
    %46 = arith.truncf %45 : vector<8x8xf32> to vector<8x8xbf16>
    %47 = vector.extract_strided_slice %7 {offsets = [0, 56], sizes = [8, 8], strides = [1, 1]} : vector<8x64xf32> to vector<8x8xf32>
    %48 = arith.truncf %47 : vector<8x8xf32> to vector<8x8xbf16>
    %cst_18 = arith.constant dense<0.000000e+00> : vector<16x8xf32>
    %49 = tpu.matmul %44, %46, %cst_18 {dimension_numbers = #tpu.dot_dimension_numbers<[1], [1], [0], [0], [0, 0, 1, 0], [], []>} : vector<16x8xbf16>, vector<8x8xbf16>, vector<16x8xf32> -> vector<16x8xf32>
    %50 = arith.addf %49, %16 : vector<16x8xf32>
    %cst_19 = arith.constant dense<0xFF800000> : vector<16xf32>
    %51 = vector.multi_reduction <maximumf>, %50, %cst_19 [1] : vector<16x8xf32> to vector<16xf32>
    %52 = vector.shape_cast %51 : vector<16xf32> to vector<16x1xf32>
    %53 = vector.broadcast %52 : vector<16x1xf32> to vector<16x8xf32>
    %54 = arith.subf %50, %53 : vector<16x8xf32>
    %55 = math.exp %54 : vector<16x8xf32>
    %cst_20 = arith.constant dense<0.000000e+00> : vector<16xf32>
    %56 = vector.multi_reduction <add>, %55, %cst_20 [1] : vector<16x8xf32> to vector<16xf32>
    %57 = vector.shape_cast %56 : vector<16xf32> to vector<16x1xf32>
    %58 = tpu.reciprocal %57 {approx = true} : vector<16x1xf32> -> vector<16x1xf32>
    %59 = arith.truncf %55 : vector<16x8xf32> to vector<16x8xbf16>
    %cst_21 = arith.constant dense<0.000000e+00> : vector<16x8xf32>
    %60 = tpu.matmul %59, %48, %cst_21 {dimension_numbers = #tpu.dot_dimension_numbers<[1], [0], [0], [1], [0, 0, 1, 1], [], []>} : vector<16x8xbf16>, vector<8x8xbf16>, vector<16x8xf32> -> vector<16x8xf32>
    %61 = vector.broadcast %58 : vector<16x1xf32> to vector<16x8xf32>
    %62 = arith.mulf %60, %61 : vector<16x8xf32>
    %63 = vector.extract_strided_slice %62 {offsets = [0, 0], sizes = [8, 8], strides = [1, 1]} : vector<16x8xf32> to vector<8x8xf32>
    %64 = vector.extract_strided_slice %62 {offsets = [8, 0], sizes = [8, 8], strides = [1, 1]} : vector<16x8xf32> to vector<8x8xf32>
    %65 = tpu.concatenate %39, %40, %63, %64 in 1 : vector<8x8xf32>, vector<8x8xf32>, vector<8x8xf32>, vector<8x8xf32> -> vector<8x32xf32>
    %66 = arith.truncf %65 : vector<8x32xf32> to vector<8x32xbf16>
    %c0_22 = arith.constant 0 : index
    %c0_23 = arith.constant 0 : index
    %67 = vector.load %arg7[%c0_22, %c0_23] : memref<32x32xbf16, #tpu.memory_space<vmem>>, vector<32x32xbf16>
    %cst_24 = arith.constant dense<0.000000e+00> : vector<8x32xf32>
    %68 = tpu.matmul %66, %67, %cst_24 {dimension_numbers = #tpu.dot_dimension_numbers<[1], [0], [0], [1], [0, 0, 1, 1], [], []>} : vector<8x32xbf16>, vector<32x32xbf16>, vector<8x32xf32> -> vector<8x32xf32>
    %c0_25 = arith.constant 0 : index
    %c0_26 = arith.constant 0 : index
    %69 = vector.load %arg8[%c0_25, %c0_26] : memref<8x32xf32, #tpu.memory_space<vmem>>, vector<8x32xf32>
    tpu.vector_store %arg8[%c0_25, %c0_26], %68 {strides = array<i32>} : memref<8x32xf32, #tpu.memory_space<vmem>>, vector<8x32xf32>,
    return
  }
  func.func @transform_0(%arg0: i32) -> (i32, i32) {
    %c0_i32 = arith.constant 0 : i32
    %c0_i32_0 = arith.constant 0 : i32
    %c0_i32_1 = arith.constant 0 : i32
    return %c0_i32, %c0_i32_0 : i32, i32
  }
  func.func @transform_1(%arg0: i32) -> (i32, i32) {
    %c0_i32 = arith.constant 0 : i32
    %c0_i32_0 = arith.constant 0 : i32
    %c0_i32_1 = arith.constant 0 : i32
    return %c0_i32, %c0_i32_0 : i32, i32
  }
  func.func @transform_2(%arg0: i32) -> (i32, i32) {
    %c0_i32 = arith.constant 0 : i32
    %c0_i32_0 = arith.constant 0 : i32
    %c0_i32_1 = arith.constant 0 : i32
    return %c0_i32, %c0_i32_0 : i32, i32
  }
  func.func @transform_3(%arg0: i32) -> (i32, i32) {
    %c0_i32 = arith.constant 0 : i32
    %c0_i32_0 = arith.constant 0 : i32
    %c0_i32_1 = arith.constant 0 : i32
    return %c0_i32, %c0_i32_0 : i32, i32
  }
  func.func @transform_4(%arg0: i32) -> (i32, i32) {
    %c0_i32 = arith.constant 0 : i32
    %c0_i32_0 = arith.constant 0 : i32
    %c0_i32_1 = arith.constant 0 : i32
    return %c0_i32, %c0_i32_0 : i32, i32
  }
  func.func @transform_5(%arg0: i32) -> (i32, i32) {
    %c0_i32 = arith.constant 0 : i32
    %c0_i32_0 = arith.constant 0 : i32
    %c0_i32_1 = arith.constant 0 : i32
    return %c0_i32, %c0_i32_0 : i32, i32
  }
  func.func @transform_6(%arg0: i32) -> (i32, i32) {
    %c0_i32 = arith.constant 0 : i32
    %c0_i32_0 = arith.constant 0 : i32
    %c0_i32_1 = arith.constant 0 : i32
    return %c0_i32, %c0_i32_0 : i32, i32
  }
  func.func @transform_7(%arg0: i32) -> (i32, i32) {
    %c0_i32 = arith.constant 0 : i32
    %c0_i32_0 = arith.constant 0 : i32
    %c0_i32_1 = arith.constant 0 : i32
    return %c0_i32, %c0_i32_0 : i32, i32
  }
}

</mosaic_0001>

<bundles_post_ra>
// kernel: tpu_custom_call.1
= control target key start
LH: loop header
LB: loop body
LE: loop exit
PB: predicated region body
PF: predicated region fallthrough
CT: control target
= control target key end

     0   :  { %12 = vsyncpa [#allocation3], 0  ;;  %s712_s0 = inlined_call_operand.vmem [shape: f32[8,32], index: 0, kind: input, shape index: {}]   ;;  %s713_s1 = inlined_call_operand.vmem [shape: bf16[32,64], index: 1, kind: input, shape index: {}]   ;;  %s714_s2 = inlined_call_operand.hbm [shape: bf16[64,64], index: 2, kind: input, shape index: {}]   ;;  %s715_s3 = inlined_call_operand.hbm [shape: f32[8,64], index: 3, kind: input, shape index: {}]   ;;  %s716_s4 = inlined_call_operand.hbm [shape: f32[8,64], index: 4, kind: input, shape index: {}]   ;;  %s717_s5 = inlined_call_operand.vmem [shape: f32[16,8], index: 5, kind: input, shape index: {}]   ;;  %s718_s6 = inlined_call_operand.hbm [shape: bf16[32,32], index: 6, kind: input, shape index: {}]   ;;  %s719_s7 = inlined_call_operand.hbm [shape: f32[8,32], index: 7, kind: output, shape index: {}]  }
   0x1   :  { %13 = vsyncpa [#allocation6], 0 }
   0x2   :  { %14 = vsyncpa [#allocation9], 0  ;;  %s38_s26 = sshll.u32 %s715_s3, 4  ;;  %s39_s26 = int_to_ptr.hbm [resolvable:$true] %s38_s26 }
   0x3   :  { %15 = vsyncpa [#allocation4], 0  ;;  %s606_s27 = smov [#allocation5]   ;;  %s24_s8 = sshll.u32 %s714_s2, 4  ;;  %s25_s8 = int_to_ptr.hbm [resolvable:$true] %s24_s8 }
   0x4   :  { %s40_s28 = sshll.u32 %s606_s27, 4  ;;  %s607_s9 = smov [#allocation2]   ;;  %s41_s28 = int_to_ptr.vmem [resolvable:$true] %s40_s28 }
   0x5   :  { %43 = dma.hbm_to_vmem [thread:$0]  %s39_s26, 128, %s41_s28, [#allocation6]  }
   0x6   :  { %s26_s10 = sshll.u32 %s607_s9, 4  ;;  %s608_s11 = smov 64   ;;  %s27_s10 = int_to_ptr.vmem [resolvable:$true] %s26_s10 }
   0x7   :  { %s609_s12 = smov 4   ;;  %s49_s3 = sshll.u32 %s716_s4, 4  ;;  %s50_s3 = int_to_ptr.hbm [resolvable:$true] %s49_s3 }
   0x8   :  { %32 = dma.hbm_to_vmem [thread:$0]  %s25_s8, 512, %s27_s10, [#allocation3], %s608_s11, %s608_s11, %s609_s12  }
   0x9   :  { %s610_s15 = smov [#allocation7]   ;;  %s61_s2 = sshll.u32 %s718_s6, 4  ;;  %s62_s2 = int_to_ptr.hbm [resolvable:$true] %s61_s2 }
   0xa   :  { %s51_s16 = sshll.u32 %s610_s15, 4  ;;  %s611_s19 = smov [#allocation8]   ;;  %s52_s16 = int_to_ptr.vmem [resolvable:$true] %s51_s16 }
   0xb   :  { %54 = dma.hbm_to_vmem [thread:$0]  %s50_s3, 128, %s52_s16, [#allocation6]  }
   0xc   :  { %s63_s20 = sshll.u32 %s611_s19, 4  ;;  %s64_s20 = int_to_ptr.vmem [resolvable:$true] %s63_s20 }
   0xd   :  { %69 = dma.hbm_to_vmem [thread:$0]  %s62_s2, 256, %s64_s20, [#allocation9], %s608_s11, %s608_s11, %s609_s12  }
   0xe   :  { %598 = dma.done.wait [#allocation3], 512  }
   0xf   :  { %599 = vsyncadd [#allocation3], 4294966784 }
  0x10   :  { %600 = dma.done.wait [#allocation6], 256  }
  0x11   :  { %601 = vsyncadd [#allocation6], 4294967040 }
  0x12   :  { %602 = dma.done.wait [#allocation9], 256  }
  0x13   :  { %603 = vsyncadd [#allocation9], 4294967040  ;;  %v439_v0 = vld [vmem:[%s713_s1 + $0x8] sm:$0xff]  ;;  %v443_v1 = vld [vmem:[#allocation2 + $0x18] sm:$0xff]  ;;  %vm105_vm0 = vcmask 261120   ;;  %vm157_vm1 = vcmask 523264  }
  0x14   :  { %115 = vmatpush.bf16.msra.mxu0 %v439_v0  ;;  %v438_v2 = vld [vmem:[%s713_s1] sm:$0xff]  ;;  %165 = vmatpush.bf16.msra.mxu1 %v443_v1  ;;  %v442_v4 = vld [vmem:[#allocation2 + $0x10] sm:$0xff]  ;;  %v441_v6 = vld [vmem:[#allocation2 + $0x8] sm:$0xff]  ;;  %s612_s1 = smov 80   ;;  %vm238_vm2 = vcmask 1043456   ;;  %s614_s25 = smov 96  }
  0x15   :  { %v87_v3 = vld [vmem:[%s712_s0] sm:$0xff]  ;;  %v176_v15 = vld [vmem:[#allocation7] sm:$0xff]  ;;  %s613_s0 = smov 88   ;;  %s615_s26 = smov 120   ;;  %vm190_vm3 = vcmask 64512   ;;  %vm341_vm4 = vcmask 130048  }
  0x16   :  { %v88_v5 = vpack.c.bf16 %v87_v3, %v87_v3  ;;  %v440_v7 = vld [vmem:[#allocation2] sm:$0xff]  ;;  %s616_s27 = smov 112   ;;  %s617_s28 = smov 72   ;;  %v180_v35 = vld [vmem:[%s717_s5 + $0x8] sm:$0xff]  ;;  %vm343_vm5 = vcmask 195584  }
  0x17   :  { %v174_v14 = vld [vmem:[#allocation5] sm:$0xff]  ;;  %s619_s10 = smov 16   ;;  %s620_s11 = smov 24  }
  0x18   :  { %116 = vmatpush.bf16.msra.mxu0 %v438_v2  ;;  %166 = vmatpush.bf16.msra.mxu1 %v442_v4  ;;  %v179_v31 = vld [vmem:[%s717_s5] sm:$0xff]  ;;  %s618_s5 = smov 8   ;;  %s621_s12 = smov [#allocation10]  }
  0x19   :  { %s384_s13 = sshll.u32 %s621_s12, 4  ;;  %s386_s15 = sshll.u32 %s719_s7, 4  ;;  %s385_s13 = int_to_ptr.vmem [resolvable:$true] %s384_s13  ;;  %s387_s15 = int_to_ptr.hbm [resolvable:$true] %s386_s15 }
  0x1b   :  { %406 = vmatmul.msk.bf16.vlgmr.msra.gmra.mxu0 %vm105_vm0, %v88_v5 }
  0x1c   :  { %167 = vmatpush.bf16.msra.mxu1 %v441_v6 }
  0x20   :  { %168 = vmatpush.bf16.msra.mxu1 %v440_v7 }
  0x98   :  { %v118_v8 = vpop.f32.mrf.mxu0 }
  0x99   :  { %v407_v9 = vclamps-f32 %v118_v8, 8.0 }
  0x9b   :  { %v124_v10 = vpack.c.bf16 %v407_v9, %v407_v9  ;;  %v175_v17 = vmul.f32 %v407_v9, %v174_v14 }
  0x9d   :  { %233 = vrot.lane.b32.xlu2 %v124_v10, %s612_s1  ;;  %424 = vmatmul.msk.bf16.vlgmr.msra.gmra.mxu1 %vm157_vm1, %v124_v10 }
  0xa0   :  { %v120_v11 = vpop.f32.mrf.mxu0 }
  0xf7   :  { %v234_v12 = vpop.permute.xlu2 %233 }
  0xf8   :  { %v240_v13 = vsel %vm238_vm2, %v234_v12, 0 }
  0xf9   :  { %249 = vmatpush.bf16.msra.mxu3 %v240_v13 }
 0x11a   :  { %v170_v16 = vpop.f32.mrf.mxu1 }
 0x11b   :  { %v177_v18 = vmul.f32 %v176_v15, %v170_v16 }
 0x11d   :  { %v178_v19 = vadd.f32 %v177_v18, %v175_v17  ;;  %v445_v17 = vld [vmem:[#allocation8 + $0x8] sm:$0xff]  ;;  %v444_v18 = vld [vmem:[#allocation8] sm:$0xff] }
 0x11f   :  { %v186_v20 = vpack.c.bf16 %v178_v19, %v178_v19 }
 0x121   :  { %261 = vrot.lane.b32.xlu2 %v186_v20, %s613_s0  ;;  %188 = vrot.lane.b32.xlu0 %v186_v20, %s614_s25 }
 0x122   :  { %v172_v21 = vpop.f32.mrf.mxu1 }
 0x129   :  { %182 = vrot.lane.b32.xlu0 %v178_v19, %s615_s26 }
 0x17b   :  { %v262_v22 = vpop.permute.xlu2 %261 }
 0x17c   :  { %v267_v23 = vsel %vm190_vm3, %v262_v22, 0 }
 0x17d   :  { %276 = vmatpush.bf16.xpose.msrb.mxu3 %v267_v23 }
 0x193   :  { %v189_v24 = vpop.permute.xlu0 %188 }
 0x194   :  { %v195_v25 = vsel %vm190_vm3, %v189_v24, 0 }
 0x195   :  { %204 = vmatpush.bf16.xpose.msra.mxu2 %v195_v25 }
 0x19b   :  { %v183_v26 = vpop.permute.xlu0 %182 }
 0x19c   :  { %v185_v27 = vpack.c.bf16 %v183_v26, %v178_v19 }
 0x19d   :  { %371 = vmatpush.bf16.msrb.mxu2 %v445_v17 }
 0x19e   :  { %259 = vrot.lane.b32.xlu0 %v185_v27, %s616_s27  ;;  %425 = vmatmul.msk.bf16.vlgmr.msra.gmra.mxu2 %vm190_vm3, %v185_v27 }
 0x1a1   :  { %372 = vmatpush.bf16.msrb.mxu2 %v444_v18 }
 0x1a6   :  { %304 = vrot.lane.b32.xlu0 %v124_v10, %s617_s28 }
 0x210   :  { %v260_v28 = vpop.permute.xlu0 %259 }
 0x218   :  { %v305_v29 = vpop.permute.xlu0 %304 }
 0x219   :  { %v310_v30 = vsel %vm238_vm2, %v305_v29, 0 }
 0x21a   :  { %319 = vmatpush.bf16.msrb.mxu0 %v310_v30 }
 0x221   :  { %v206_v32 = vpop.f32.mrf.mxu2 }
 0x222   :  { %v207_v33 = vadd.f32 %v206_v32, %v179_v31 }
 0x224   :  { %v211_v34 = vsel %vm190_vm3, %v207_v33, -inf }
 0x225   :  { %212 = vmax.xlane.f32.xlu1 %v211_v34 }
 0x229   :  { %v208_v36 = vpop.f32.mrf.mxu2 }
 0x22a   :  { %v209_v37 = vadd.f32 %v208_v36, %v180_v35 }
 0x22c   :  { %v214_v38 = vsel %vm190_vm3, %v209_v37, -inf }
 0x22d   :  { %215 = vmax.xlane.f32.xlu1 %v214_v38 }
 0x298   :  { %v213_v39 = vpop.xlane.xlu1 %212 }
 0x299   :  { %v217_v40 = vsub.f32 %v207_v33, %v213_v39 }
 0x29b   :  { %v219_v41 = vmul.f32 1.442695, %v217_v40 }
 0x29d   :  { %462 = vpow2.f32 %v219_v41 }
 0x2a0   :  { %v216_v42 = vpop.xlane.xlu1 %215 }
 0x2a1   :  { %v218_v43 = vsub.f32 %v209_v37, %v216_v42 }
 0x2a3   :  { %v221_v44 = vmul.f32 1.442695, %v218_v43  ;;  %v463_v45 = vpop.eup %462 }
 0x2a4   :  { %v223_v57 = vsel %vm190_vm3, %v463_v45, 0.0 }
 0x2a5   :  { %464 = vpow2.f32 %v221_v44 }
 0x2ab   :  { %v465_v46 = vpop.eup %464 }
 0x2ac   :  { %v231_v47 = vpack.c.bf16 %v465_v46, %v463_v45  ;;  %v226_v56 = vsel %vm190_vm3, %v465_v46, 0.0 }
 0x2ae   :  { %426 = vmatmul.msk.bf16.vlgmr.msra.gmra.mxu3 %vm190_vm3, %v231_v47 }
 0x2be   :  { %427 = vmatmul.msk.bf16.vlgmr.msrb.gmra.mxu3 %vm190_vm3, %v260_v28 }
 0x331   :  { %v251_v48 = vpop.f32.mrf.mxu3 }
 0x339   :  { %v253_v49 = vpop.f32.mrf.mxu3 }
 0x341   :  { %v278_v50 = vpop.f32.mrf.mxu3 }
 0x342   :  { %v279_v51 = vadd.f32 %v278_v50, %v179_v31 }
 0x344   :  { %v283_v52 = vsel %vm190_vm3, %v279_v51, -inf }
 0x345   :  { %284 = vmax.xlane.f32.xlu1 %v283_v52 }
 0x349   :  { %v280_v53 = vpop.f32.mrf.mxu3 }
 0x34a   :  { %v281_v54 = vadd.f32 %v280_v53, %v180_v35 }
 0x34c   :  { %v286_v55 = vsel %vm190_vm3, %v281_v54, -inf }
 0x34d   :  { %287 = vmax.xlane.f32.xlu2 %v286_v55  ;;  %227 = vadd.xlane.f32.xlu1 %v226_v56 }
 0x355   :  { %224 = vadd.xlane.f32.xlu1 %v223_v57 }
 0x3b8   :  { %v285_v58 = vpop.xlane.xlu1 %284 }
 0x3b9   :  { %v289_v59 = vsub.f32 %v279_v51, %v285_v58 }
 0x3bb   :  { %v291_v60 = vmul.f32 1.442695, %v289_v59 }
 0x3bd   :  { %466 = vpow2.f32 %v291_v60 }
 0x3c0   :  { %v288_v61 = vpop.xlane.xlu2 %287  ;;  %v228_v5 = vpop.xlane.xlu1 %227 }
 0x3c1   :  { %v290_v62 = vsub.f32 %v281_v54, %v288_v61 }
 0x3c3   :  { %v467_v63 = vpop.eup %466  ;;  %v293_v0 = vmul.f32 1.442695, %v290_v62 }
 0x3c4   :  { %v295_v1 = vsel %vm190_vm3, %v467_v63, 0.0 }
 0x3c5   :  { %468 = vpow2.f32 %v293_v0  ;;  %296 = vadd.xlane.f32.xlu0 %v295_v1 }
 0x3c6   :  { %470 = vrcp.f32 %v228_v5 }
 0x3c8   :  { %v225_v8 = vpop.xlane.xlu1 %224 }
 0x3cb   :  { %v469_v2 = vpop.eup %468 }
 0x3cc   :  { %v298_v3 = vsel %vm190_vm3, %v469_v2, 0.0  ;;  %v303_v4 = vpack.c.bf16 %v469_v2, %v467_v63  ;;  %v471_v6 = vpop.eup %470 }
 0x3cd   :  { %299 = vadd.xlane.f32.xlu1 %v298_v3  ;;  %v257_v7 = vmul.f32 %v471_v6, %v253_v49 }
 0x3ce   :  { %428 = vmatmul.msk.bf16.vlgmr.msrb.gmra.mxu0 %vm190_vm3, %v303_v4 }
 0x3e6   :  { %329 = vrot.lane.b32.xlu1 %v257_v7, %s618_s5 }
 0x438   :  { %v297_v9 = vpop.xlane.xlu0 %296 }
 0x439   :  { %472 = vrcp.f32 %v297_v9 }
 0x43f   :  { %v473_v11 = vpop.eup %472 }
 0x440   :  { %v300_v10 = vpop.xlane.xlu1 %299 }
 0x441   :  { %474 = vrcp.f32 %v300_v10 }
 0x442   :  { %476 = vrcp.f32 %v225_v8 }
 0x447   :  { %v475_v14 = vpop.eup %474 }
 0x448   :  { %v477_v20 = vpop.eup %476 }
 0x449   :  { %v256_v21 = vmul.f32 %v477_v20, %v251_v48 }
 0x44b   :  { %v321_v12 = vpop.f32.mrf.mxu0 }
 0x44c   :  { %v326_v13 = vmul.f32 %v473_v11, %v321_v12 }
 0x44e   :  { %333 = vrot.lane.b32.xlu2 %v326_v13, %s619_s10 }
 0x453   :  { %v323_v15 = vpop.f32.mrf.mxu0 }
 0x454   :  { %v327_v16 = vmul.f32 %v475_v14, %v323_v15 }
 0x456   :  { %337 = vrot.lane.b32.xlu1 %v327_v16, %s620_s11 }
 0x458   :  { %v330_v19 = vpop.permute.xlu1 %329 }
 0x459   :  { %v340_v23 = vsel %vm190_vm3, %v256_v21, %v330_v19 }
 0x4a8   :  { %v334_v22 = vpop.permute.xlu2 %333 }
 0x4a9   :  { %v342_v24 = vsel %vm341_vm4, %v340_v23, %v334_v22 }
 0x4c8   :  { %v338_v25 = vpop.permute.xlu1 %337 }
 0x4c9   :  { %v344_v26 = vsel %vm343_vm5, %v342_v24, %v338_v25 }
 0x4ca   :  { %v345_v27 = vpack.c.bf16 %v344_v26, %v344_v26 }
 0x4cc   :  { %437 = vmatmul.msk.bf16.vlgmr.msrb.gmra.mxu2 %vm105_vm0, %v345_v27 }
 0x54f   :  { %v374_v28 = vpop.f32.mrf.mxu2 }
 0x550   :  { %378 = vst.msk [vmem:[#allocation10] sm:$0xff] %vm105_vm0, %v374_v28 }
 0x551   :  { %389 = dma.vmem_to_hbm [thread:$0]  %s385_s13, 128, %s387_s15, [#allocation4]  }
 0x557   :  { %v376_v29 = vpop.f32.mrf.mxu2 }
 0x558   :  { %604 = dma.done.wait [#allocation4], 128  }
 0x559   :  { %605 = vsyncadd [#allocation4], 4294967168 }
 0x55a   :  { %394 = vsyncpa [#allocation3], 1 }
 0x55b   :  { %395 = vsyncpa [#allocation6], 1 }
 0x55c   :  { %396 = vsyncpa [#allocation9], 1 }
 0x55d   :  { %397 = vsyncpa [#allocation4], 1 }

</bundles_post_ra>
